<compile_context>
chip_gen: v7x
topology: tpu7x:2x2x1
jax: 0.10.0
libtpu: 0.0.40
codegen_flags: <defaults>
</compile_context>

<pallas_src>
import functools

import jax
import jax.numpy as jnp
from jax.experimental import pallas as pl
from jax.experimental.pallas import tpu as pltpu


# ----------------------------------------------------------------------------
# helpers
# ----------------------------------------------------------------------------
def _vmem_capacity_bytes():
    try:
        info = pltpu.get_tpu_info()
        cap = getattr(info, "vmem_capacity_bytes", None)
        if cap:
            return int(cap)
    except Exception:
        pass
    return 64 * 1024 * 1024  # conservative fallback (v7x-sized)


def _pick_tile_t(t_out, V, bytes_per_t, budget):
    """Largest divisor of t_out whose lane width d*V is a multiple of 128 (or
    the full extent) and whose tile-dependent working set fits the budget."""
    divisors = [d for d in range(1, t_out + 1) if t_out % d == 0]
    lane_ok = [d for d in divisors if (d * V) % 128 == 0 or d == t_out]
    fits = [d for d in lane_ok if d * bytes_per_t <= budget]
    if fits:
        return max(fits)
    return min(lane_ok)


# ----------------------------------------------------------------------------
# Kernel 1: temporal conv (fused k-tap MXU contraction) + per-channel stats.
#   x_ref    : (1, Cin, T*V) bf16               (stride == 1 fast path)
#              (1, k*Cin_pad, t_out*V) bf16     (stride  > 1, prebuilt im2col)
#   w_ref    : (Cout, k*Cin_pad) bf16           fused weight (zero pad columns)
#   o_ref    : (1, Cout, tile_t*V) bf16         conv output tile (lane-dense)
#   sum_ref  : (1, Cout, 1) f32                 per-channel sum
#   sq_ref   : (1, Cout, 1) f32                 per-channel sum of squares
#   scratch  : [rhs_ref (k*Cin_pad, t_out*V) bf16]  (only if not prebuilt)
#              psum_ref/psq_ref (Cout, 128) f32      lane partial accumulators
# ----------------------------------------------------------------------------
def conv_stats_kernel(x_ref, w_ref, o_ref, sum_ref, sq_ref, *scratch, k,
                      dilation, pad, T, V, t_out, tile_t, num_t_tiles,
                      cin, cin_pad, prebuilt):
    tt = pl.program_id(1)
    L = tile_t * V

    if prebuilt:
        psum_ref, psq_ref = scratch
    else:
        rhs_ref, psum_ref, psq_ref = scratch

        # Build the fused im2col RHS once per batch element (temporal tile 0):
        # row block kt*cin_pad + c holds x_padded[c, t + kt*dilation] for
        # output time t.  Row offsets are static and packing-aligned; only
        # these O(k) per-sample copies may be lane-misaligned.
        @pl.when(tt == 0)
        def _build():
            for kt in range(k):
                r0 = kt * cin_pad
                shift = kt * dilation - pad
                t_lo = max(0, -shift)
                t_hi = min(t_out, T - shift)
                if cin_pad > cin:                      # channel-padding rows
                    rhs_ref[r0 + cin:r0 + cin_pad, :] = jnp.zeros(
                        (cin_pad - cin, t_out * V), rhs_ref.dtype)
                if t_lo > 0:                           # left temporal zero pad
                    rhs_ref[r0:r0 + cin, :t_lo * V] = jnp.zeros(
                        (cin, t_lo * V), rhs_ref.dtype)
                if t_hi < t_out:                       # right temporal zero pad
                    rhs_ref[r0:r0 + cin, t_hi * V:t_out * V] = jnp.zeros(
                        (cin, (t_out - t_hi) * V), rhs_ref.dtype)
                if t_hi > t_lo:                        # shifted input copy
                    rhs_ref[r0:r0 + cin, t_lo * V:t_hi * V] = (
                        x_ref[0, :, (t_lo + shift) * V:(t_hi + shift) * V])

    # Per-tile RHS: a lane-aligned slice (128-multiple offset when tiled).
    if num_t_tiles == 1:
        rhs = x_ref[0, :, :] if prebuilt else rhs_ref[:, :]
    else:
        start = pl.multiple_of(tt * L, 128)
        rhs = (x_ref[0, :, pl.ds(start, L)] if prebuilt
               else rhs_ref[:, pl.ds(start, L)])

    # One MXU contraction with K = k*Cin_pad, bf16 in / f32 accumulate.
    # (no conv bias: it cancels exactly under training-mode BatchNorm)
    y = jnp.dot(w_ref[...], rhs, preferred_element_type=jnp.float32)  # (Cout,L)
    o_ref[0, :, :] = y.astype(o_ref.dtype)

    # ---- per-channel batch statistics (from the f32 accumulator) ----------
    if num_t_tiles == 1:
        # Single tile: one cross-lane reduce per batch element.
        sum_ref[0, :, :] = jnp.sum(y, axis=1, keepdims=True)
        sq_ref[0, :, :] = jnp.sum(y * y, axis=1, keepdims=True)
    else:
        # Multi-tile: lane-chunked VPU adds into (Cout, 128) partials; the
        # XLU cross-lane reduce happens only at the last tile.
        @pl.when(tt == 0)
        def _init():
            psum_ref[...] = jnp.zeros_like(psum_ref)
            psq_ref[...] = jnp.zeros_like(psq_ref)

        s_acc = psum_ref[...]
        q_acc = psq_ref[...]
        nf = L // 128  # exact: L % 128 == 0 guaranteed when num_t_tiles > 1
        for c in range(nf):
            blk = y[:, c * 128:(c + 1) * 128]
            s_acc = s_acc + blk
            q_acc = q_acc + blk * blk
        psum_ref[...] = s_acc
        psq_ref[...] = q_acc

        @pl.when(tt == num_t_tiles - 1)
        def _finalize():
            sum_ref[0, :, :] = jnp.sum(psum_ref[...], axis=1, keepdims=True)
            sq_ref[0, :, :] = jnp.sum(psq_ref[...], axis=1, keepdims=True)


# ----------------------------------------------------------------------------
# Kernel 2: BatchNorm affine apply   y = x * scale[c] + shift[c]
#   x_ref : (1, Cout, tile*V) bf16     scale/shift : (Cout, 1) f32
#   o_ref : (1, Cout, tile*V) f32
# ----------------------------------------------------------------------------
def bn_apply_kernel(x_ref, scale_ref, shift_ref, o_ref):
    o_ref[...] = (x_ref[...].astype(jnp.float32) * scale_ref[...]
                  + shift_ref[...]).astype(o_ref.dtype)


# ----------------------------------------------------------------------------
# Wrapper
# ----------------------------------------------------------------------------
def temporal_conv_bn(x_nchw, weight, bias, gamma, beta, *, kernel_size,
                     stride=1, dilation=1, eps=1e-5, tile_t=None):
    # Training-mode BatchNorm subtracts the batch mean (which contains the
    # conv bias), so the bias cancels exactly -> intentionally not applied.
    del bias

    N, Cin, T, V = x_nchw.shape
    Cout = weight.shape[0]
    k = kernel_size
    pad = (k + (k - 1) * (dilation - 1) - 1) // 2
    t_out = (T + 2 * pad - dilation * (k - 1) - 1) // stride + 1

    compute_dtype = jnp.bfloat16
    itemsize = jnp.dtype(compute_dtype).itemsize
    row_align = 8 * (4 // itemsize)               # 16 rows for bf16 packing
    cin_pad = -(-Cin // row_align) * row_align

    # PyTorch weight (Cout, Cin, k, 1) -> fused (Cout, k*Cin_pad); padded
    # channel columns are zero (matching zeroed scratch rows).
    w = jnp.transpose(weight[:, :, :, 0].astype(jnp.float32), (0, 2, 1))
    if cin_pad > Cin:
        w = jnp.pad(w, ((0, 0), (0, 0), (0, cin_pad - Cin)))
    w2 = w.reshape(Cout, k * cin_pad).astype(compute_dtype)

    vmem_cap = _vmem_capacity_bytes()
    vmem_limit = (vmem_cap * 3) // 4              # ~48 MiB v7x, ~96 MiB v5e/v6e

    if stride == 1:
        x_in = x_nchw.astype(compute_dtype).reshape(N, Cin, T * V)
        in_rows, in_cols = Cin, T * V
        prebuilt = False
    else:
        # TODO(synk): stride > 1 fast path (in-kernel strided im2col); for now
        # the (k x larger) im2col RHS is materialized in plain JAX and streamed.
        xp = jnp.pad(x_nchw.astype(jnp.float32),
                     ((0, 0), (0, 0), (pad, pad), (0, 0)))
        taps = []
        for kt in range(k):
            s0 = kt * dilation
            xs = xp[:, :, s0:s0 + (t_out - 1) * stride + 1:stride, :]
            if cin_pad > Cin:
                xs = jnp.pad(xs, ((0, 0), (0, cin_pad - Cin), (0, 0), (0, 0)))
            taps.append(xs)
        x_in = jnp.stack(taps, axis=1).reshape(N, k * cin_pad, t_out * V)
        x_in = x_in.astype(compute_dtype)
        in_rows, in_cols = k * cin_pad, t_out * V
        prebuilt = True

    # --- conv temporal tile --------------------------------------------------
    bytes_per_t = V * (2 * Cout * itemsize        # double-buffered bf16 output
                       + Cout * 4                 # f32 accumulator y
                       + k * cin_pad * itemsize)  # rhs slice
    resident = (2 * in_rows * in_cols * itemsize          # input block (x2)
                + 2 * Cout * k * cin_pad * itemsize       # weights (x2)
                + 2 * Cout * 128 * 4                      # stats partials
                + (0 if prebuilt
                   else k * cin_pad * t_out * V * itemsize))  # im2col scratch
    if tile_t is None:
        budget = max(vmem_limit - resident - (2 << 20), bytes_per_t)
        tile_t = _pick_tile_t(t_out, V, bytes_per_t, budget)
    assert t_out % tile_t == 0
    num_t_tiles = t_out // tile_t
    assert num_t_tiles == 1 or (tile_t * V) % 128 == 0

    kernel = functools.partial(
        conv_stats_kernel, k=k, dilation=dilation, pad=pad, T=T, V=V,
        t_out=t_out, tile_t=tile_t, num_t_tiles=num_t_tiles,
        cin=Cin, cin_pad=cin_pad, prebuilt=prebuilt)

    scratch_shapes = []
    if not prebuilt:
        scratch_shapes.append(pltpu.VMEM((k * cin_pad, t_out * V), compute_dtype))
    scratch_shapes += [pltpu.VMEM((Cout, 128), jnp.float32),
                       pltpu.VMEM((Cout, 128), jnp.float32)]

    # TODO(synk): for very long T on v7x (64 MiB VMEM), replace the whole-row
    # input block + per-sample im2col scratch with a halo'd manual-DMA tile
    # pipeline (memory_space=pl.ANY + make_async_copy) so VMEM stays O(tile).
    # TODO(synk): with N == 1 on v7x one TensorCore idles; add a leading core
    # axis splitting temporal tiles with per-core partial stats.
    conv_out, sums, sqs = pl.pallas_call(
        kernel,
        grid=(N, num_t_tiles),
        in_specs=[pl.BlockSpec((1, in_rows, in_cols), lambda n, t: (n, 0, 0)),
                  pl.BlockSpec((Cout, k * cin_pad), lambda n, t: (0, 0))],
        out_specs=(pl.BlockSpec((1, Cout, tile_t * V), lambda n, t: (n, 0, t)),
                   pl.BlockSpec((1, Cout, 1), lambda n, t: (n, 0, 0)),
                   pl.BlockSpec((1, Cout, 1), lambda n, t: (n, 0, 0))),
        out_shape=(jax.ShapeDtypeStruct((N, Cout, t_out * V), compute_dtype),
                   jax.ShapeDtypeStruct((N, Cout, 1), jnp.float32),
                   jax.ShapeDtypeStruct((N, Cout, 1), jnp.float32)),
        scratch_shapes=scratch_shapes,
        compiler_params=pltpu.CompilerParams(
            dimension_semantics=("parallel", "arbitrary"),
            vmem_limit_bytes=vmem_limit),
    )(x_in, w2)

    # Tiny per-channel reduction over the batch axis (everything heavy stayed
    # inside the kernel).
    count = jnp.float32(N * t_out * V)
    mean = jnp.sum(sums, axis=(0, 2)) / count
    var = jnp.maximum(jnp.sum(sqs, axis=(0, 2)) / count - mean * mean, 0.0)
    # TODO(synk): switch to a shifted/centered accumulation if E[x^2]-E[x]^2
    # precision becomes a concern at very large N*T*V.
    scale = gamma.astype(jnp.float32) / jnp.sqrt(var + eps)
    shift = beta.astype(jnp.float32) - mean * scale

    # --- BN apply: pure elementwise, so use the biggest lane-dense tile -----
    bn_bytes_per_t = V * Cout * (2 * itemsize + 2 * 4 + 4)
    bn_tile_t = _pick_tile_t(t_out, V, bn_bytes_per_t, (vmem_limit * 3) // 4)
    num_bn_tiles = t_out // bn_tile_t

    out = pl.pallas_call(
        bn_apply_kernel,
        grid=(N, num_bn_tiles),
        in_specs=[pl.BlockSpec((1, Cout, bn_tile_t * V), lambda n, t: (n, 0, t)),
                  pl.BlockSpec((Cout, 1), lambda n, t: (0, 0)),
                  pl.BlockSpec((Cout, 1), lambda n, t: (0, 0))],
        out_specs=pl.BlockSpec((1, Cout, bn_tile_t * V), lambda n, t: (n, 0, t)),
        out_shape=jax.ShapeDtypeStruct((N, Cout, t_out * V), jnp.float32),
        compiler_params=pltpu.CompilerParams(
            dimension_semantics=("parallel", "parallel"),
            vmem_limit_bytes=vmem_limit),
    )(conv_out, scale[:, None], shift[:, None])

    # split minor dim back to (t_out, V): free reshape, still NCHW.
    return out.reshape(N, Cout, t_out, V)


# ----------------------------------------------------------------------------
# Pure-JAX reference (inputs routed through bf16 to match MXU input precision;
# everything else stays f32).
# ----------------------------------------------------------------------------
def reference_forward(x, weight, bias, gamma, beta, *, kernel_size, stride=1,
                      dilation=1, eps=1e-5):
    pad = (kernel_size + (kernel_size - 1) * (dilation - 1) - 1) // 2
    xq = x.astype(jnp.bfloat16).astype(jnp.float32)
    wq = weight.astype(jnp.bfloat16).astype(jnp.float32)
    y = jax.lax.conv_general_dilated(
        xq, wq,
        window_strides=(stride, 1),
        padding=((pad, pad), (0, 0)),
        rhs_dilation=(dilation, 1),
        dimension_numbers=("NCHW", "OIHW", "NCHW"),
        precision=jax.lax.Precision.HIGHEST,
    ) + bias.astype(jnp.float32)[None, :, None, None]
    mean = jnp.mean(y, axis=(0, 2, 3), keepdims=True)
    var = jnp.var(y, axis=(0, 2, 3), keepdims=True)
    yhat = (y - mean) / jnp.sqrt(var + eps)
    return yhat * gamma[None, :, None, None] + beta[None, :, None, None]


if __name__ == "__main__":
    def _check(name, N, Cin, Cout, T, V, kernel_size, stride, dilation,
               tile_t=None):
        key = jax.random.PRNGKey(0)
        k_x, k_w, k_b, k_g, k_be = jax.random.split(key, 5)
        x = jax.random.normal(k_x, (N, Cin, T, V), dtype=jnp.float32)
        weight = jax.random.normal(
            k_w, (Cout, Cin, kernel_size, 1), dtype=jnp.float32) * 0.1
        bias = jax.random.normal(k_b, (Cout,), dtype=jnp.float32) * 0.1
        gamma = 1.0 + 0.1 * jax.random.normal(k_g, (Cout,), dtype=jnp.float32)
        beta = 0.1 * jax.random.normal(k_be, (Cout,), dtype=jnp.float32)

        out = temporal_conv_bn(x, weight, bias, gamma, beta,
                               kernel_size=kernel_size, stride=stride,
                               dilation=dilation, tile_t=tile_t)
        out = jax.block_until_ready(out)
        ref = jax.block_until_ready(reference_forward(
            x, weight, bias, gamma, beta, kernel_size=kernel_size,
            stride=stride, dilation=dilation))
        assert out.shape == ref.shape, (name, out.shape, ref.shape)
        err = float(jnp.max(jnp.abs(out - ref)))
        assert err < 3e-2, (name, err)

    # Main case: x is NCHW = (N, C, T, V).
    _check("base", N=2, Cin=4, Cout=8, T=16, V=16, kernel_size=3,
           stride=1, dilation=1)
    # Multi-tile temporal path + non-aligned Cin + dilation (forced tile_t=8).
    _check("tiled", N=2, Cin=3, Cout=8, T=32, V=16, kernel_size=3,
           stride=1, dilation=2, tile_t=8)
    # stride > 1 fallback (wrapper-side im2col path).
    _check("strided", N=2, Cin=4, Cout=8, T=16, V=16, kernel_size=3,
           stride=2, dilation=1)

    print("KERNEL_OK")
</pallas_src>

<mosaic_0001>
module attributes {stable_mosaic.version = 11 : i64} {
  func.func @conv_stats_kernel(%arg0: i32, %arg1: i32, %arg2: memref<1x4x256xbf16, #tpu.memory_space<vmem>>, %arg3: memref<8x48xbf16, #tpu.memory_space<vmem>>, %arg4: memref<1x8x256xbf16, #tpu.memory_space<vmem>>, %arg5: memref<1x8x1xf32, #tpu.memory_space<vmem>>, %arg6: memref<1x8x1xf32, #tpu.memory_space<vmem>>, %arg7: memref<48x256xbf16, #tpu.memory_space<vmem>>, %arg8: memref<8x128xf32, #tpu.memory_space<vmem>>, %arg9: memref<8x128xf32, #tpu.memory_space<vmem>>) attributes {dimension_semantics = [#tpu.dimension_semantics<parallel>, #tpu.dimension_semantics<arbitrary>], iteration_bounds = array<i64: 2, 1>, scalar_prefetch = 0 : i64, scratch_operands = 3 : i64, tpu.core_type = #tpu.core_type<tc>, window_params = [{transform_indices = @transform_0, window_bounds = array<i64: 1, 4, 256>}, {pipeline_mode = #tpu.pipeline_mode<synchronous>, transform_indices = @transform_1, window_bounds = array<i64: 8, 48>}, {transform_indices = @transform_2, window_bounds = array<i64: 1, 8, 256>}, {transform_indices = @transform_3, window_bounds = array<i64: 1, 8, 1>}, {transform_indices = @transform_4, window_bounds = array<i64: 1, 8, 1>}]} {
    %c0_i32 = arith.constant 0 : i32
    %0 = arith.cmpi eq, %arg1, %c0_i32 : i32
    %1 = arith.extui %0 : i1 to i32
    %c0_i32_0 = arith.constant 0 : i32
    %2 = arith.cmpi ne, %1, %c0_i32_0 : i32
    scf.if %2 {
      %cst_15 = arith.constant 0.000000e+00 : bf16
      %21 = vector.broadcast %cst_15 : bf16 to vector<12x256xbf16>
      %c4 = arith.constant 4 : index
      %c0_16 = arith.constant 0 : index
      %22 = vector.load %arg7[%c4, %c0_16] : memref<48x256xbf16, #tpu.memory_space<vmem>>, vector<12x256xbf16>
      tpu.vector_store %arg7[%c4, %c0_16], %21 {strides = array<i32>} : memref<48x256xbf16, #tpu.memory_space<vmem>>, vector<12x256xbf16>,
      %cst_17 = arith.constant 0.000000e+00 : bf16
      %23 = vector.broadcast %cst_17 : bf16 to vector<4x16xbf16>
      %c0_18 = arith.constant 0 : index
      %c0_19 = arith.constant 0 : index
      %24 = vector.load %arg7[%c0_18, %c0_19] : memref<48x256xbf16, #tpu.memory_space<vmem>>, vector<4x16xbf16>
      tpu.vector_store %arg7[%c0_18, %c0_19], %23 {strides = array<i32>} : memref<48x256xbf16, #tpu.memory_space<vmem>>, vector<4x16xbf16>,
      %c0_20 = arith.constant 0 : index
      %c0_21 = arith.constant 0 : index
      %c0_22 = arith.constant 0 : index
      %25 = vector.load %arg2[%c0_20, %c0_21, %c0_22] : memref<1x4x256xbf16, #tpu.memory_space<vmem>>, vector<1x4x240xbf16>
      %26 = vector.shape_cast %25 : vector<1x4x240xbf16> to vector<4x240xbf16>
      %c0_23 = arith.constant 0 : index
      %c16 = arith.constant 16 : index
      %27 = vector.load %arg7[%c0_23, %c16] : memref<48x256xbf16, #tpu.memory_space<vmem>>, vector<4x240xbf16>
      tpu.vector_store %arg7[%c0_23, %c16], %26 {strides = array<i32>} : memref<48x256xbf16, #tpu.memory_space<vmem>>, vector<4x240xbf16>,
      %cst_24 = arith.constant 0.000000e+00 : bf16
      %28 = vector.broadcast %cst_24 : bf16 to vector<12x256xbf16>
      %c20 = arith.constant 20 : index
      %c0_25 = arith.constant 0 : index
      %29 = vector.load %arg7[%c20, %c0_25] : memref<48x256xbf16, #tpu.memory_space<vmem>>, vector<12x256xbf16>
      tpu.vector_store %arg7[%c20, %c0_25], %28 {strides = array<i32>} : memref<48x256xbf16, #tpu.memory_space<vmem>>, vector<12x256xbf16>,
      %c0_26 = arith.constant 0 : index
      %c0_27 = arith.constant 0 : index
      %c0_28 = arith.constant 0 : index
      %30 = vector.load %arg2[%c0_26, %c0_27, %c0_28] : memref<1x4x256xbf16, #tpu.memory_space<vmem>>, vector<1x4x256xbf16>
      %31 = vector.shape_cast %30 : vector<1x4x256xbf16> to vector<4x256xbf16>
      %c16_29 = arith.constant 16 : index
      %c0_30 = arith.constant 0 : index
      %32 = vector.load %arg7[%c16_29, %c0_30] : memref<48x256xbf16, #tpu.memory_space<vmem>>, vector<4x256xbf16>
      tpu.vector_store %arg7[%c16_29, %c0_30], %31 {strides = array<i32>} : memref<48x256xbf16, #tpu.memory_space<vmem>>, vector<4x256xbf16>,
      %cst_31 = arith.constant 0.000000e+00 : bf16
      %33 = vector.broadcast %cst_31 : bf16 to vector<12x256xbf16>
      %c36 = arith.constant 36 : index
      %c0_32 = arith.constant 0 : index
      %34 = vector.load %arg7[%c36, %c0_32] : memref<48x256xbf16, #tpu.memory_space<vmem>>, vector<12x256xbf16>
      tpu.vector_store %arg7[%c36, %c0_32], %33 {strides = array<i32>} : memref<48x256xbf16, #tpu.memory_space<vmem>>, vector<12x256xbf16>,
      %cst_33 = arith.constant 0.000000e+00 : bf16
      %35 = vector.broadcast %cst_33 : bf16 to vector<4x16xbf16>
      %c32 = arith.constant 32 : index
      %c240 = arith.constant 240 : index
      %36 = vector.load %arg7[%c32, %c240] : memref<48x256xbf16, #tpu.memory_space<vmem>>, vector<4x16xbf16>
      tpu.vector_store %arg7[%c32, %c240], %35 {strides = array<i32>} : memref<48x256xbf16, #tpu.memory_space<vmem>>, vector<4x16xbf16>,
      %c0_34 = arith.constant 0 : index
      %c0_35 = arith.constant 0 : index
      %c16_36 = arith.constant 16 : index
      %37 = vector.load %arg2[%c0_34, %c0_35, %c16_36] : memref<1x4x256xbf16, #tpu.memory_space<vmem>>, vector<1x4x240xbf16>
      %38 = vector.shape_cast %37 : vector<1x4x240xbf16> to vector<4x240xbf16>
      %c32_37 = arith.constant 32 : index
      %c0_38 = arith.constant 0 : index
      %39 = vector.load %arg7[%c32_37, %c0_38] : memref<48x256xbf16, #tpu.memory_space<vmem>>, vector<4x240xbf16>
      tpu.vector_store %arg7[%c32_37, %c0_38], %38 {strides = array<i32>} : memref<48x256xbf16, #tpu.memory_space<vmem>>, vector<4x240xbf16>,
    } else {
    }
    %c0 = arith.constant 0 : index
    %c0_1 = arith.constant 0 : index
    %3 = vector.load %arg7[%c0, %c0_1] : memref<48x256xbf16, #tpu.memory_space<vmem>>, vector<48x256xbf16>
    %c0_2 = arith.constant 0 : index
    %c0_3 = arith.constant 0 : index
    %4 = vector.load %arg3[%c0_2, %c0_3] : memref<8x48xbf16, #tpu.memory_space<vmem>>, vector<8x48xbf16>
    %cst = arith.constant dense<0.000000e+00> : vector<8x256xf32>
    %5 = tpu.matmul %4, %3, %cst {dimension_numbers = #tpu.dot_dimension_numbers<[1], [0], [0], [1], [0, 0, 1, 1], [], []>} : vector<8x48xbf16>, vector<48x256xbf16>, vector<8x256xf32> -> vector<8x256xf32>
    %6 = arith.truncf %5 : vector<8x256xf32> to vector<8x256xbf16>
    %c0_4 = arith.constant 0 : index
    %c0_5 = arith.constant 0 : index
    %c0_6 = arith.constant 0 : index
    %7 = vector.load %arg4[%c0_4, %c0_5, %c0_6] : memref<1x8x256xbf16, #tpu.memory_space<vmem>>, vector<1x8x256xbf16>
    %8 = vector.shape_cast %7 : vector<1x8x256xbf16> to vector<8x256xbf16>
    %9 = vector.shape_cast %6 : vector<8x256xbf16> to vector<1x8x256xbf16>
    tpu.vector_store %arg4[%c0_4, %c0_5, %c0_6], %9 {strides = array<i32>} : memref<1x8x256xbf16, #tpu.memory_space<vmem>>, vector<1x8x256xbf16>,
    %cst_7 = arith.constant dense<0.000000e+00> : vector<8xf32>
    %10 = vector.multi_reduction <add>, %5, %cst_7 [1] : vector<8x256xf32> to vector<8xf32>
    %11 = vector.shape_cast %10 : vector<8xf32> to vector<8x1xf32>
    %c0_8 = arith.constant 0 : index
    %c0_9 = arith.constant 0 : index
    %c0_10 = arith.constant 0 : index
    %12 = vector.load %arg5[%c0_8, %c0_9, %c0_10] : memref<1x8x1xf32, #tpu.memory_space<vmem>>, vector<1x8x1xf32>
    %13 = vector.shape_cast %12 : vector<1x8x1xf32> to vector<8x1xf32>
    %14 = vector.shape_cast %11 : vector<8x1xf32> to vector<1x8x1xf32>
    tpu.vector_store %arg5[%c0_8, %c0_9, %c0_10], %14 {strides = array<i32>} : memref<1x8x1xf32, #tpu.memory_space<vmem>>, vector<1x8x1xf32>,
    %15 = arith.mulf %5, %5 : vector<8x256xf32>
    %cst_11 = arith.constant dense<0.000000e+00> : vector<8xf32>
    %16 = vector.multi_reduction <add>, %15, %cst_11 [1] : vector<8x256xf32> to vector<8xf32>
    %17 = vector.shape_cast %16 : vector<8xf32> to vector<8x1xf32>
    %c0_12 = arith.constant 0 : index
    %c0_13 = arith.constant 0 : index
    %c0_14 = arith.constant 0 : index
    %18 = vector.load %arg6[%c0_12, %c0_13, %c0_14] : memref<1x8x1xf32, #tpu.memory_space<vmem>>, vector<1x8x1xf32>
    %19 = vector.shape_cast %18 : vector<1x8x1xf32> to vector<8x1xf32>
    %20 = vector.shape_cast %17 : vector<8x1xf32> to vector<1x8x1xf32>
    tpu.vector_store %arg6[%c0_12, %c0_13, %c0_14], %20 {strides = array<i32>} : memref<1x8x1xf32, #tpu.memory_space<vmem>>, vector<1x8x1xf32>,
    return
  }
  func.func @transform_0(%arg0: i32, %arg1: i32) -> (i32, i32, i32) {
    %c0_i32 = arith.constant 0 : i32
    %c0_i32_0 = arith.constant 0 : i32
    %c0_i32_1 = arith.constant 0 : i32
    return %arg0, %c0_i32, %c0_i32_0 : i32, i32, i32
  }
  func.func @transform_1(%arg0: i32, %arg1: i32) -> (i32, i32) {
    %c0_i32 = arith.constant 0 : i32
    %c0_i32_0 = arith.constant 0 : i32
    %c0_i32_1 = arith.constant 0 : i32
    return %c0_i32, %c0_i32_0 : i32, i32
  }
  func.func @transform_2(%arg0: i32, %arg1: i32) -> (i32, i32, i32) {
    %c0_i32 = arith.constant 0 : i32
    %c0_i32_0 = arith.constant 0 : i32
    return %arg0, %c0_i32, %arg1 : i32, i32, i32
  }
  func.func @transform_3(%arg0: i32, %arg1: i32) -> (i32, i32, i32) {
    %c0_i32 = arith.constant 0 : i32
    %c0_i32_0 = arith.constant 0 : i32
    %c0_i32_1 = arith.constant 0 : i32
    return %arg0, %c0_i32, %c0_i32_0 : i32, i32, i32
  }
  func.func @transform_4(%arg0: i32, %arg1: i32) -> (i32, i32, i32) {
    %c0_i32 = arith.constant 0 : i32
    %c0_i32_0 = arith.constant 0 : i32
    %c0_i32_1 = arith.constant 0 : i32
    return %arg0, %c0_i32, %c0_i32_0 : i32, i32, i32
  }
}

</mosaic_0001>

<bundles_post_ra>
// kernel: tpu_custom_call.1
= control target key start
LH: loop header
LB: loop body
LE: loop exit
PB: predicated region body
PF: predicated region fallthrough
CT: control target
= control target key end

     0   :  { %10 = vsyncpa [#allocation6], 0  ;;  %s1075_s0 = inlined_call_operand.hbm [shape: bf16[2,4,256], index: 0, kind: input, shape index: {}]   ;;  %s1076_s1 = inlined_call_operand.hbm [shape: bf16[8,48], index: 1, kind: input, shape index: {}]   ;;  %s1077_s2 = inlined_call_operand.hbm [shape: bf16[2,8,256], index: 2, kind: output, shape index: {0}]   ;;  %s1078_s3 = inlined_call_operand.vmem [shape: f32[2,8,1], index: 3, kind: output, shape index: {1}]   ;;  %s1079_s4 = inlined_call_operand.vmem [shape: f32[2,8,1], index: 4, kind: output, shape index: {2}]  }
   0x1   :  { %12 = vsyncpa [#allocation6 + $0x1], 0 }
   0x2   :  { %13 = vsyncpa [#allocation9], 0 }
   0x3   :  { %14 = vsyncpa [#allocation7], 0 }
   0x4   :  { %16 = vsyncpa [#allocation7 + $0x1], 0  ;;  %s856_s15 = smov 0   ;;  %s858_s16 = smov 0  }
   0x5   :  { %s860_s17 = smov 0   ;;  %s862_s18 = smov 0  }
   0x6   :  { %s864_s19 = smov 0   ;;  %s866_s20 = smov 0  }
   0x7 LB: > { %s576_s21 = sadd.s32 4294967295, %s823_s20   ;;  %s577_s22 = sadd.s32 4294967294, %s823_s20   ;;  %s823_s20 = sphi %s866_s20, %s22_s20   ;;  %s819_s19 = sphi %s864_s19, %s1104_s19   ;;  %s815_s18 = sphi %s862_s18, %s1103_s18   ;;  %s811_s17 = sphi %s860_s17, %s1102_s17   ;;  %s807_s16 = sphi %s858_s16, %s1101_s16   ;;  %s803_s15 = sphi %s856_s15, %s1100_s15  }
   0x8   : > { %p54_p0 = scmp.ne.s32.totalorder %s807_s16, %s803_s15  ;;  %p890_p1 = scmp.eq.s32.totalorder %s576_s21, 0 }
   0x9   : > { %p894_p2 = scmp.eq.s32.totalorder %s576_s21, 1  ;;  %p107_p3 = scmp.eq.s32.totalorder %s577_s22, 1 }
   0xa   : > { %s1084_s23 = scalar_select %p890_p1, 1, 0 }
   0xb   : > { %s1085_s24 = scalar_select %p894_p2, 1, 0 }
   0xc   : > { %p900_p4 = por %p890_p1, %p54_p0  ;;  %p578_p5 = scmp.ge.s32.totalorder %s823_s20, 1 }
   0xd   : > { %p905_p6 = por %p107_p3, %p54_p0  ;;  %p166_p7 = scmp.lt.s32.totalorder %s823_s20, 3 }
   0xe   : > { %s1086_s25 = scalar_select %p900_p4, 1, 0 }
   0xf   : > { %s1087_s26 = scalar_select %p905_p6, 1, 0 }
  0x10   : > { %p910_p8 = pnand %p578_p5, %p166_p7  ;;  %s825_s28 = smov [#allocation8]  }
  0x11   : > { %s179_s29 = sshll.u32 %s825_s28, 4  ;;  %s34_s5 = sadd.s32 1, %s819_s19  ;;  %s180_s29 = int_to_ptr.vmem [resolvable:$true] %s179_s29 }
  0x12   : > { %s1088_s27 = scalar_select %p910_p8, 1, 0 }
  0x13   : > { %p611_p10 = pneg %p910_p8  ;;  %s41_s6 = sadd.s32 1, %s811_s17 }
  0x14   : > { %p925_p12 = scmp.ge.s32.totalorder %s34_s5, 2  ;;  %s679_s10 = scalar_lea.hbm %s1076_s1, 64 }
  0x15   : > { %p919_p11 = pnand %p611_p10, %p890_p1  ;;  %p680_p13 = scmp.ne.s32.totalorder %s1076_s1, %s679_s10 }
  0x16   : > { %s1090_s7 = scalar_select %p925_p12, 1, 0 }
  0x17   : > { %p681_p0 = pneg %p919_p11  ;;  %p686_p7 = scmp.lt.u32.totalorder %s679_s10, %s1076_s1 }
  0x19   : > { %p682_p3 = pnand %p681_p0, %p680_p13 }
  0x1b   : > { %p683_p5 = pneg %p682_p3 }
  0x1d   : > { %p688_p10 = pnand %p686_p7, %p683_p5 }
  0x1f   : > { %691 = shalt.err (!%p688_p10)
}
  0x20   : > { %s692_s21 = scalar_lea.vmem %s180_s29, 64  ;;  %p700_p4 = scmp.lt.s32.totalorder %s180_s29, %s180_s29 }
  0x21   : > { %p693_p9 = scmp.ne.s32.totalorder %s180_s29, %s692_s21  ;;  %p701_p8 = scmp.lt.s32.totalorder %s692_s21, %s692_s21 }
  0x23   : > { %p695_p6 = pnand %p693_p9, %p681_p0  ;;  %p702_p2 = por %p701_p8, %p700_p4 }
  0x25   : > { %p696_p1 = pneg %p695_p6 }
  0x27   : > { %p703_p12 = pnand %p702_p2, %p696_p1 }
  0x29   : > { %706 = shalt.err (!%p703_p12)
}
  0x2a   : > { %614 = dma.hbm_to_vmem [thread:$0]  (!%p919_p11), %s1076_s1, 64, %s180_s29, [#allocation9]  }
  0x2b   : > { %p1091_p4 = scmp.ne.s32.totalorder %s1090_s7, 0  ;;  %p48_p1 = scmp.ne.s32.totalorder %s811_s17, %s807_s16 }
  0x2c   : > { %p49_p2 = scmp.eq.s32.totalorder %s823_s20, 0  ;;  %p624_p6 = scmp.lt.s32.totalorder %s823_s20, 2 }
  0x2d   : > { %s1106_s5 = smov (%p1091_p4, %s34_s5), 0  ;;  %p1092_p12 = scmp.ne.s32.totalorder %s1085_s24, 0 }
  0x2e   : > { %s38_s30 = ssub.s32 %s819_s19, %s1106_s5  ;;  %p50_p9 = por %p49_p2, %p48_p1 }
  0x2f   : > { %p39_p8 = scmp.eq.s32.totalorder %s38_s30, 0  ;;  %p957_p13 = por %p1092_p12, %p48_p1 }
  0x30   : > { %s190_s9 = sand.u32 1, %s811_s17   ;;  %s600_s7 = sshll.u32 %s819_s19, 6 }
  0x31   : > { %s965_s10 = scalar_select %p39_p8, %s811_s17, %s41_s6  }
  0x32   : > { %s581_s29 = sshll.u32 %s190_s9, 2  ;;  %s971_s13 = scalar_lea.hbm %s1075_s0, %s600_s7 }
  0x33   : > { %s194_s24 = scalar_lea.vmem [#allocation5], %s581_s29  ;;  %p975_p11 = pnand %p624_p6, %p50_p9 }
  0x34   : > { %s202_s14 = sshll.u32 %s194_s24, 4  ;;  %s191_s6 = scalar_lea.sflag [#allocation6], %s190_s9  ;;  %s973_s14 = int_to_ptr.vmem [resolvable:$true] %s202_s14 }
  0x35   : > { %s707_s22 = scalar_lea.hbm %s971_s13, 64  ;;  %p709_p3 = pneg %p975_p11 }
  0x36   : > { %p708_p0 = scmp.ne.s32.totalorder %s971_s13, %s707_s22  ;;  %s712_s29 = scalar_lea.hbm %s1075_s0, 128 }
  0x37   : > { %p713_p10 = scmp.lt.u32.totalorder %s971_s13, %s1075_s0  ;;  %p714_p4 = scmp.lt.u32.totalorder %s712_s29, %s707_s22 }
  0x38   : > { %p710_p5 = pnand %p709_p3, %p708_p0  ;;  %p716_p2 = scmp.lt.u32.totalorder %s707_s22, %s971_s13 }
  0x39   : > { %p715_p1 = por %p714_p4, %p713_p10 }
  0x3a   : > { %p711_p7 = pneg %p710_p5 }
  0x3b   : > { %p717_p6 = por %p716_p2, %p715_p1 }
  0x3d   : > { %p718_p8 = pnand %p717_p6, %p711_p7 }
  0x3f   : > { %721 = shalt.err (!%p718_p8)
}
  0x40   : > { %s722_s9 = scalar_lea.vmem %s973_s14, 64  ;;  %s826_s12 = smov [#allocation5]  }
  0x41   : > { %p723_p9 = scmp.ne.s32.totalorder %s973_s14, %s722_s9  ;;  %s727_s24 = sshll.u32 %s826_s12, 4  ;;  %s728_s24 = int_to_ptr.vmem [resolvable:$false] %s727_s24 }
  0x42   : > { %s729_s28 = scalar_lea.vmem %s728_s24, 128  ;;  %p730_p5 = scmp.lt.s32.totalorder %s973_s14, %s728_s24 }
  0x43   : > { %p725_p12 = pnand %p723_p9, %p709_p3  ;;  %p731_p10 = scmp.lt.s32.totalorder %s729_s28, %s722_s9 }
  0x45   : > { %p726_p0 = pneg %p725_p12  ;;  %p732_p4 = por %p731_p10, %p730_p5 }
  0x47   : > { %p733_p1 = pnand %p732_p4, %p726_p0 }
  0x49   : > { %736 = shalt.err (!%p733_p1)
}
  0x4a   : > { %618 = dma.hbm_to_vmem [thread:$0]  (!%p975_p11), %s971_s13, 64, %s973_s14, %s191_s6  }
  0x4b   : > { %p1095_p7 = scmp.ne.s32.totalorder %s1088_s27, 0 }
  0x4c   : > { %s1007_s22 = sand.u32 (!%p1095_p7), 1, %s807_s16   ;;  %p1096_p3 = scmp.ne.s32.totalorder (!%p1095_p7), %s1086_s25, 0 }
  0x4d   : > { %211 = sbr.rel (%p1095_p7) target bundleno = 594 (0x252), region = 28  ;;  %s585_s30 = sshll.u32 (!%p1095_p7), %s1007_s22, 2 }
  0x4e   : > { %s214_s29 = scalar_lea.sflag (!%p1095_p7), [#allocation6], %s1007_s22  ;;  %s217_s7 = scalar_lea.vmem (!%p1095_p7), [#allocation5], %s585_s30 }
  0x54   : > { %790 = dma.done.wait (%p1096_p3), %s214_s29, 64  }
  0x55   : > { %792 = vsyncadd (%p1096_p3), %s214_s29, 4294967232  ;;  %p1097_p2 = scmp.ne.s32.totalorder %s1084_s23, 0 }
  0x57   : > { %794 = dma.done.wait (%p1097_p2), [#allocation9], 64  }
  0x58   : > { %796 = vsyncadd (%p1097_p2), [#allocation9], 4294967232  ;;  %vm270_vm0 = vcmask 123904   ;;  %v827_v0 = vmov 0   ;;  %vm311_vm1 = vcmask 1042304   ;;  %s828_s25 = smov 16  }
  0x59   : > { %271 = vst.msk [vmem:[#allocation2] sm:$0x3] %vm270_vm0, %v827_v0  ;;  %268 = vst [vmem:[#allocation2] sm:$0xfc] %v827_v0  ;;  %377 = vmatprep.mubr.bf16.mxu0 %v827_v0  ;;  %s829_s27 = smov 112   ;;  %vm290_vm2 = vcmask 1041536  }
  0x5a   : > { %269 = vst [vmem:[#allocation2 + $0x8] sm:$0xfc] %v827_v0  ;;  %293 = vst [vmem:[#allocation2 + $0x10] sm:$0xfc] %v827_v0  ;;  %vm286_vm3 = vcmask 130048   ;;  %vm327_vm4 = vcmask 916480  }
  0x5b   : > { %294 = vst [vmem:[#allocation2 + $0x18] sm:$0xfc] %v827_v0  ;;  %309 = vst [vmem:[#allocation2 + $0x20] sm:$0xfc] %v827_v0  ;;  %vm332_vm5 = vcmask 910336   ;;  %vm341_vm6 = vcmask 392192  }
  0x5c   : > { %310 = vst [vmem:[#allocation2 + $0x28] sm:$0xfc] %v827_v0  ;;  %312 = vst.msk [vmem:[#allocation2 + $0x28] sm:$0x3] %vm311_vm1, %v827_v0  ;;  %v340_v15 = vld [vmem:[#allocation8] sm:$0xf] }
  0x5d   : > { %v590_v1 = vld.sshfl [vmem:[%s217_s7] sm:$0x33 pattern:$0x76325410]  ;;  %s587_s23 = sshll.u32 %s1007_s22, 3  ;;  %s602_s14 = sshll.u32 %s815_s18, 7 }
  0x5e   : > { %282 = vrot.lane.b32.xlu0 %v590_v1, %s828_s25  ;;  %v281_v2 = vcombine.high %v590_v1, %v590_v1  ;;  %323 = vrot.lane.b32.xlu1 %v590_v1, %s829_s27  ;;  %307 = vst [vmem:[#allocation2 + $0x10] sm:$0x3] %v590_v1  ;;  %s241_s13 = scalar_lea.vmem [#allocation10], %s587_s23  ;;  %s1024_s11 = scalar_lea.hbm %s1077_s2, %s602_s14 }
  0x5f   : > { %s431_s9 = sshll.u32 %s241_s13, 4  ;;  %s407_s12 = scalar_lea.sflag [#allocation7], %s1007_s22  ;;  %s432_s9 = int_to_ptr.vmem [resolvable:$true] %s431_s9 }
  0x60   : > { %308 = vst [vmem:[#allocation2 + $0x18] sm:$0x3] %v281_v2  ;;  %s737_s24 = scalar_lea.vmem %s432_s9, 128  ;;  %s830_s28 = smov [#allocation10]  }
  0x61   : > { %p738_p11 = scmp.ne.s32.totalorder %s432_s9, %s737_s24  ;;  %s741_s30 = sshll.u32 %s830_s28, 4  ;;  %s742_s30 = int_to_ptr.vmem [resolvable:$false] %s741_s30 }
  0x62   : > { %284 = vrot.lane.b32.xlu0 %v281_v2, %s828_s25  ;;  %325 = vrot.lane.b32.xlu1 %v281_v2, %s829_s27  ;;  %s743_s29 = scalar_lea.vmem %s742_s30, 256  ;;  %p744_p9 = scmp.lt.s32.totalorder %s432_s9, %s742_s30 }
  0x63   : > { %p739_p6 = pnand %p738_p11, %p957_p13  ;;  %p745_p12 = scmp.lt.s32.totalorder %s743_s29, %s737_s24 }
  0x65   : > { %v336_v12 = vld [vmem:[#allocation2 + $0x10] sm:$0xff]  ;;  %p740_p8 = pneg %p739_p6  ;;  %p746_p0 = por %p745_p12, %p744_p9 }
  0x67   : > { %v337_v10 = vld [vmem:[#allocation2 + $0x18] sm:$0xff]  ;;  %p747_p5 = pnand %p746_p0, %p740_p8 }
  0xd0   : > { %v283_v3 = vpop.permute.xlu0 %282  ;;  %v324_v4 = vpop.permute.xlu1 %323 }
  0xd1   : > { %291 = vst.msk [vmem:[#allocation2] sm:$0x3] %vm290_vm2, %v283_v3 }
  0xd4   : > { %v285_v5 = vpop.permute.xlu0 %284  ;;  %v326_v6 = vpop.permute.xlu1 %325 }
  0xd5   : > { %v287_v7 = vsel %vm286_vm3, %v283_v3, %v285_v5  ;;  %v328_v8 = vsel %vm327_vm4, %v324_v4, %v326_v6  ;;  %333 = vst.msk [vmem:[#allocation2 + $0x28] sm:$0x3] %vm332_vm5, %v326_v6 }
  0xd6   : > { %292 = vst [vmem:[#allocation2 + $0x8] sm:$0x3] %v287_v7  ;;  %331 = vst [vmem:[#allocation2 + $0x20] sm:$0x3] %v328_v8 }
  0xd8   : > { %v334_v11 = vld [vmem:[#allocation2] sm:$0xff] }
  0xdc   : > { %v339_v13 = vld [vmem:[#allocation2 + $0x28] sm:$0xff] }
  0xdd   : > { %v335_v9 = vld [vmem:[#allocation2 + $0x8] sm:$0xff]  ;;  %v338_v14 = vld [vmem:[#allocation2 + $0x20] sm:$0xff] }
  0xde   : > { %345 = vmatprep.subr.bf16.mxu0 %v335_v9 }
  0xdf   : > { %346 = vmatpush1.bf16.msra.mxu0 %v334_v11 }
  0xe0   : > { %347 = vmatprep.subr.bf16.mxu0 %v337_v10 }
  0xe3   : > { %348 = vmatpush1.bf16.msra.mxu0 %v336_v12 }
  0xe4   : > { %349 = vmatprep.subr.bf16.mxu0 %v339_v13 }
  0xe7   : > { %350 = vmatpush1.bf16.msra.mxu0 %v338_v14 }
  0xea   : > { %593 = vmatmul.mubr.msk.bf16.vlgmr.msra.gmra.mrb[0].mxu0 %vm341_vm6, %v340_v15 }
 0x1bd   : > { %v379_v16 = vpop.f32.mrb[0].mxu0 }
 0x1be   : > { %v381_v17 = vpop.f32.mrb[1].mxu0  ;;  %v400_v18 = vmul.f32 %v379_v16, %v379_v16 }
 0x1bf   : > { %v601_v19 = vpack.c.bf16 %v381_v17, %v379_v16  ;;  %v383_v20 = vpop.f32.mrb[2].mxu0  ;;  %v395_v21 = vadd.f32 %v381_v17, %v379_v16  ;;  %v401_v22 = vmul.f32 %v381_v17, %v381_v17 }
 0x1c0   : > { %v384_v23 = vpop.f32.mrb[3].mxu0 }
 0x1c1   : > { %396 = vadd.xlane.f32.xlu0 %v395_v21  ;;  %v402_v24 = vadd.f32 %v401_v22, %v400_v18  ;;  %394 = vst [vmem:[%s241_s13] sm:$0xff] %v601_v19 }
 0x1c3   : > { %403 = vadd.xlane.f32.xlu1 %v402_v24 }
 0x1c4   : > { %750 = shalt.err (!%p747_p5)
}
 0x1c5   : > { %s751_s22 = scalar_lea.hbm %s1024_s11, 128  ;;  %s755_s27 = scalar_lea.hbm %s1077_s2, 256 }
 0x1c6   : > { %p752_p10 = scmp.ne.s32.totalorder %s1024_s11, %s751_s22  ;;  %p756_p7 = scmp.lt.u32.totalorder %s1024_s11, %s1077_s2 }
 0x1c7   : > { %p757_p3 = scmp.lt.u32.totalorder %s755_s27, %s751_s22  ;;  %p759_p11 = scmp.lt.u32.totalorder %s751_s22, %s1024_s11 }
 0x1c8   : > { %p753_p4 = pnand %p752_p10, %p957_p13 }
 0x1c9   : > { %p758_p2 = por %p757_p3, %p756_p7 }
 0x1ca   : > { %p754_p1 = pneg %p753_p4 }
 0x1cb   : > { %p760_p6 = por %p759_p11, %p758_p2 }
 0x1cd   : > { %p761_p8 = pnand %p760_p6, %p754_p1 }
 0x1cf   : > { %764 = shalt.err (!%p761_p8)
}
 0x1d0   : > { %609 = dma.vmem_to_hbm [thread:$0]  (%p957_p13), %s432_s9, 128, %s1024_s11, %s407_s12   ;;  %vm398_vm7 = vcmask 7168  }
 0x1d1   : > { %p255_p9 = scmp.lt.s32.totalorder %s815_s18, 1 }
 0x1d3   : > { %s1108_s18 = smov (!%p255_p9, %s815_s18), 1 }
 0x1d4   : > { %s588_s14 = sshll.u32 %s1108_s18, 3 }
 0x1d5   : > { %s258_s24 = scalar_lea.vmem %s1078_s3, %s588_s14  ;;  %s262_s29 = scalar_lea.vmem %s1079_s4, %s588_s14 }
 0x24e   : > { %v397_v25 = vpop.xlane.xlu0 %396 }
 0x24f   : > { %399 = vst.msk [vmem:[%s258_s24] sm:$0xff] %vm398_vm7, %v397_v25 }
 0x250   : > { %v404_v26 = vpop.xlane.xlu1 %403 }
 0x251   : > { %405 = vst.msk [vmem:[%s262_s29] sm:$0xff] %vm398_vm7, %v404_v26 }
 0x252 PF: > { %s449_s8 = sand.u32 1, %s803_s15   ;;  %p1098_p13 = scmp.ne.s32.totalorder %s1087_s26, 0 }
 0x253   : > { %p1099_p12 = scmp.ge.s32.totalorder %s823_s20, 2  ;;  %s450_s18 = scalar_lea.sflag [#allocation7], %s449_s8 }
 0x255   : > { %p620_p0 = pnand %p1099_p12, %p1098_p13 }
 0x257   : > { %798 = dma.done.wait (!%p620_p0), %s450_s18, 128  }
 0x258   : > { %800 = vsyncadd (!%p620_p0), %s450_s18, 4294967168  ;;  %s22_s20 = sadd.s32 1, %s823_s20   ;;  %s1100_s15 = smov %s807_s16 }
 0x259   : > { %p19_p5 = scmp.ge.s32.totalorder %s22_s20, 4   ;;  %s1101_s16 = smov %s811_s17 }
 0x25a   : > { %s1102_s17 = smov %s965_s10  ;;  %s1103_s18 = smov %s819_s19 }
 0x25b   : > { %s1104_s19 = smov %s1106_s5  ;;  %21 = sbr.rel (!%p19_p5) target bundleno = 7 (0x7), region = 105 }
 0x262   :  { %469 = vsyncpa [#allocation6], 1 }
 0x263   :  { %471 = vsyncpa [#allocation6 + $0x1], 1 }
 0x264   :  { %472 = vsyncpa [#allocation9], 1 }
 0x265   :  { %473 = vsyncpa [#allocation7], 1 }
 0x266   :  { %475 = vsyncpa [#allocation7 + $0x1], 1 }

</bundles_post_ra>
